<compile_context>
chip_gen: v6e
topology: v6e:2x2x1
jax: 0.10.0
libtpu: 0.0.40
codegen_flags: <defaults>
</compile_context>

<pallas_src>
import jax
import jax.numpy as jnp
from jax import lax
from jax.experimental import pallas as pl
from jax.experimental.pallas import tpu as pltpu

_LANES = 128
_BLOCK_ROWS = 512     # sublane rows per grid step (512x128 f32 = 256 KiB / input)
_CHUNK_ROWS = 64      # inner accumulation chunk (multiple of 8)


def _make_kernel(block_rows, rows_total, needs_mask):
    f32 = jnp.float32

    def kernel(a_ref, b_ref, g_ref, o_ref):
        # a_ref, b_ref: (block_rows, 128) views of the two channel halves of
        # `pre`; g_ref: matching view of gt; o_ref: (2, 8, 128) partial sums.
        if needs_mask:
            j = pl.program_id(1)
            rows_left = rows_total - j * block_rows  # valid rows in this block

        def partial_sums(lo, nrows):
            a = a_ref[pl.ds(lo, nrows), :].astype(f32)
            b = b_ref[pl.ds(lo, nrows), :].astype(f32)
            g = g_ref[pl.ds(lo, nrows), :].astype(f32)
            d = a - b
            same = d * (1.0 - g)
            diff = d * g
            if needs_mask:
                rix = lax.broadcasted_iota(jnp.int32, (nrows, _LANES), 0) + lo
                valid = rix < rows_left
                same = jnp.where(valid, same, 0.0)
                diff = jnp.where(valid, diff, 0.0)
            s2 = same * same
            d2 = diff * diff
            if nrows % 8 == 0:
                # tile-preserving reshape; sum over leading dim = pure VPU adds
                ps = s2.reshape(nrows // 8, 8, _LANES).sum(axis=0)
                pd = d2.reshape(nrows // 8, 8, _LANES).sum(axis=0)
            else:
                # tiny-input fallback: single sublane reduce, placed in row 0
                row0 = lax.broadcasted_iota(jnp.int32, (8, _LANES), 0) == 0
                ps = jnp.where(
                    row0,
                    jnp.broadcast_to(s2.sum(axis=0, keepdims=True), (8, _LANES)),
                    0.0)
                pd = jnp.where(
                    row0,
                    jnp.broadcast_to(d2.sum(axis=0, keepdims=True), (8, _LANES)),
                    0.0)
            return ps, pd

        if block_rows % _CHUNK_ROWS == 0 and block_rows > _CHUNK_ROWS:
            n_chunks = block_rows // _CHUNK_ROWS

            def body(c, carry):
                acc_s, acc_d = carry
                lo = pl.multiple_of(c * _CHUNK_ROWS, _CHUNK_ROWS)
                ps, pd = partial_sums(lo, _CHUNK_ROWS)
                return acc_s + ps, acc_d + pd

            zero = jnp.zeros((8, _LANES), f32)
            acc_s, acc_d = lax.fori_loop(0, n_chunks, body, (zero, zero),
                                         unroll=True)
        else:
            acc_s, acc_d = partial_sums(0, block_rows)

        o_ref[0] = acc_s
        o_ref[1] = acc_d

    return kernel


def changeloss_new(pre, gt):
    """pre: (B, 2C, *spatial); gt broadcastable to (B, C, *spatial)."""
    B = pre.shape[0]
    C = pre.shape[1] // 2
    spatial = tuple(pre.shape[2:])
    hw = 1
    for s in spatial:
        hw *= s
    M = C * hw            # elements per (batch, half)
    n = B * M             # elements in each mean

    gt_b = jnp.broadcast_to(gt, (B, C) + spatial)

    rows = (M + _LANES - 1) // _LANES
    m_pad = rows * _LANES

    pre2 = pre.reshape(2 * B, M)   # free reshape of contiguous NCHW buffer
    gt2 = gt_b.reshape(B, M)
    if m_pad != M:
        # TODO(synk): the lane tail could be masked in-kernel instead; the pad
        # copy only triggers when C*H*W is not a multiple of 128.
        pre2 = jnp.pad(pre2, ((0, 0), (0, m_pad - M)))
        gt2 = jnp.pad(gt2, ((0, 0), (0, m_pad - M)))
    pre_v = pre2.reshape(2 * B, rows, _LANES)
    gt_v = gt2.reshape(B, rows, _LANES)

    block_rows = _BLOCK_ROWS if rows >= _BLOCK_ROWS else rows
    num_j = (rows + block_rows - 1) // block_rows
    needs_mask = (rows % block_rows) != 0

    kernel = _make_kernel(block_rows, rows, needs_mask)

    parts = pl.pallas_call(
        kernel,
        out_shape=jax.ShapeDtypeStruct((B, num_j, 2, 8, _LANES), jnp.float32),
        grid_spec=pltpu.PrefetchScalarGridSpec(
            num_scalar_prefetch=0,
            grid=(B, num_j),
            in_specs=[
                # first channel half: rows 2*b of the (2B, rows, 128) view
                pl.BlockSpec((None, block_rows, _LANES),
                             lambda b, j: (2 * b, j, 0)),
                # second channel half: rows 2*b + 1
                pl.BlockSpec((None, block_rows, _LANES),
                             lambda b, j: (2 * b + 1, j, 0)),
                # gt
                pl.BlockSpec((None, block_rows, _LANES),
                             lambda b, j: (b, j, 0)),
            ],
            out_specs=pl.BlockSpec((None, None, 2, 8, _LANES),
                                   lambda b, j: (b, j, 0, 0, 0)),
        ),
        compiler_params=pltpu.CompilerParams(
            dimension_semantics=("parallel", "parallel")),
    )(pre_v, pre_v, gt_v)

    sums = jnp.sum(parts, axis=(0, 1, 3, 4))      # (2,) f32
    inv_n = jnp.float32(1.0 / n)
    mse_same = sums[0] * inv_n
    mse_diff = sums[1] * inv_n
    return mse_same + (jnp.float32(1.0) - mse_diff)


def _reference(pre, gt):
    channel = pre.shape[1] // 2
    gt_small = 1.0 - gt
    pre1 = pre[:, :channel] * gt_small
    pre2 = pre[:, channel:] * gt_small
    pre1_d = pre[:, :channel] * gt
    pre2_d = pre[:, channel:] * gt
    return jnp.mean((pre1 - pre2) ** 2) + (1.0 - jnp.mean((pre1_d - pre2_d) ** 2))


if __name__ == "__main__":
    key = jax.random.PRNGKey(0)
    k1, k2 = jax.random.split(key)
    B, C, H, W = 2, 4, 16, 16
    pre = jax.random.normal(k1, (B, 2 * C, H, W), dtype=jnp.float32)
    gt = (jax.random.uniform(k2, (B, C, H, W)) > 0.5).astype(jnp.float32)

    loss = changeloss_new(pre, gt)
    loss = jax.block_until_ready(loss)

    ref = _reference(pre, gt)
    assert jnp.allclose(loss, ref, rtol=1e-5, atol=1e-5), (loss, ref)
    print("KERNEL_OK")
</pallas_src>

<mosaic_0001>
module attributes {stable_mosaic.version = 11 : i64} {
  func.func @kernel(%arg0: i32, %arg1: i32, %arg2: memref<1x8x128xf32, #tpu.memory_space<vmem>>, %arg3: memref<1x8x128xf32, #tpu.memory_space<vmem>>, %arg4: memref<1x8x128xf32, #tpu.memory_space<vmem>>, %arg5: memref<1x1x2x8x128xf32, #tpu.memory_space<vmem>>) attributes {dimension_semantics = [#tpu.dimension_semantics<parallel>, #tpu.dimension_semantics<parallel>], iteration_bounds = array<i64: 2, 1>, scalar_prefetch = 0 : i64, scratch_operands = 0 : i64, tpu.core_type = #tpu.core_type<tc>, window_params = [{transform_indices = @transform_0, window_bounds = array<i64: 1, 8, 128>}, {transform_indices = @transform_1, window_bounds = array<i64: 1, 8, 128>}, {transform_indices = @transform_2, window_bounds = array<i64: 1, 8, 128>}, {transform_indices = @transform_3, window_bounds = array<i64: 1, 1, 2, 8, 128>}]} {
    %c0 = arith.constant 0 : index
    %c0_0 = arith.constant 0 : index
    %c0_1 = arith.constant 0 : index
    %0 = vector.load %arg2[%c0, %c0_0, %c0_1] : memref<1x8x128xf32, #tpu.memory_space<vmem>>, vector<1x8x128xf32>
    %1 = vector.shape_cast %0 : vector<1x8x128xf32> to vector<8x128xf32>
    %c0_2 = arith.constant 0 : index
    %c0_3 = arith.constant 0 : index
    %c0_4 = arith.constant 0 : index
    %2 = vector.load %arg3[%c0_2, %c0_3, %c0_4] : memref<1x8x128xf32, #tpu.memory_space<vmem>>, vector<1x8x128xf32>
    %3 = vector.shape_cast %2 : vector<1x8x128xf32> to vector<8x128xf32>
    %c0_5 = arith.constant 0 : index
    %c0_6 = arith.constant 0 : index
    %c0_7 = arith.constant 0 : index
    %4 = vector.load %arg4[%c0_5, %c0_6, %c0_7] : memref<1x8x128xf32, #tpu.memory_space<vmem>>, vector<1x8x128xf32>
    %5 = vector.shape_cast %4 : vector<1x8x128xf32> to vector<8x128xf32>
    %6 = arith.subf %1, %3 : vector<8x128xf32>
    %cst = arith.constant 1.000000e+00 : f32
    %7 = vector.broadcast %cst : f32 to vector<8x128xf32>
    %8 = arith.subf %7, %5 : vector<8x128xf32>
    %9 = arith.mulf %6, %8 : vector<8x128xf32>
    %10 = arith.mulf %6, %5 : vector<8x128xf32>
    %11 = arith.mulf %9, %9 : vector<8x128xf32>
    %12 = arith.mulf %10, %10 : vector<8x128xf32>
    %13 = vector.shape_cast %11 : vector<8x128xf32> to vector<1x8x128xf32>
    %cst_8 = arith.constant dense<0.000000e+00> : vector<8x128xf32>
    %14 = vector.multi_reduction <add>, %13, %cst_8 [0] : vector<1x8x128xf32> to vector<8x128xf32>
    %15 = vector.shape_cast %12 : vector<8x128xf32> to vector<1x8x128xf32>
    %cst_9 = arith.constant dense<0.000000e+00> : vector<8x128xf32>
    %16 = vector.multi_reduction <add>, %15, %cst_9 [0] : vector<1x8x128xf32> to vector<8x128xf32>
    %c0_10 = arith.constant 0 : index
    %c0_11 = arith.constant 0 : index
    %c0_12 = arith.constant 0 : index
    %c0_13 = arith.constant 0 : index
    %c0_14 = arith.constant 0 : index
    %17 = vector.load %arg5[%c0_10, %c0_11, %c0_12, %c0_13, %c0_14] : memref<1x1x2x8x128xf32, #tpu.memory_space<vmem>>, vector<1x1x1x8x128xf32>
    %18 = vector.shape_cast %17 : vector<1x1x1x8x128xf32> to vector<8x128xf32>
    %19 = vector.shape_cast %14 : vector<8x128xf32> to vector<1x1x1x8x128xf32>
    tpu.vector_store %arg5[%c0_10, %c0_11, %c0_12, %c0_13, %c0_14], %19 {strides = array<i32>} : memref<1x1x2x8x128xf32, #tpu.memory_space<vmem>>, vector<1x1x1x8x128xf32>,
    %c0_15 = arith.constant 0 : index
    %c0_16 = arith.constant 0 : index
    %c1 = arith.constant 1 : index
    %c0_17 = arith.constant 0 : index
    %c0_18 = arith.constant 0 : index
    %20 = vector.load %arg5[%c0_15, %c0_16, %c1, %c0_17, %c0_18] : memref<1x1x2x8x128xf32, #tpu.memory_space<vmem>>, vector<1x1x1x8x128xf32>
    %21 = vector.shape_cast %20 : vector<1x1x1x8x128xf32> to vector<8x128xf32>
    %22 = vector.shape_cast %16 : vector<8x128xf32> to vector<1x1x1x8x128xf32>
    tpu.vector_store %arg5[%c0_15, %c0_16, %c1, %c0_17, %c0_18], %22 {strides = array<i32>} : memref<1x1x2x8x128xf32, #tpu.memory_space<vmem>>, vector<1x1x1x8x128xf32>,
    return
  }
  func.func @transform_0(%arg0: i32, %arg1: i32) -> (i32, i32, i32) {
    %c2_i32 = arith.constant 2 : i32
    %0 = arith.muli %c2_i32, %arg0 : i32
    %c0_i32 = arith.constant 0 : i32
    %c0_i32_0 = arith.constant 0 : i32
    return %0, %arg1, %c0_i32 : i32, i32, i32
  }
  func.func @transform_1(%arg0: i32, %arg1: i32) -> (i32, i32, i32) {
    %c2_i32 = arith.constant 2 : i32
    %0 = arith.muli %c2_i32, %arg0 : i32
    %c1_i32 = arith.constant 1 : i32
    %1 = arith.addi %0, %c1_i32 : i32
    %c0_i32 = arith.constant 0 : i32
    %c0_i32_0 = arith.constant 0 : i32
    return %1, %arg1, %c0_i32 : i32, i32, i32
  }
  func.func @transform_2(%arg0: i32, %arg1: i32) -> (i32, i32, i32) {
    %c0_i32 = arith.constant 0 : i32
    %c0_i32_0 = arith.constant 0 : i32
    return %arg0, %arg1, %c0_i32 : i32, i32, i32
  }
  func.func @transform_3(%arg0: i32, %arg1: i32) -> (i32, i32, i32, i32, i32) {
    %c0_i32 = arith.constant 0 : i32
    %c0_i32_0 = arith.constant 0 : i32
    %c0_i32_1 = arith.constant 0 : i32
    %c0_i32_2 = arith.constant 0 : i32
    return %arg0, %arg1, %c0_i32, %c0_i32_0, %c0_i32_1 : i32, i32, i32, i32, i32
  }
}

</mosaic_0001>

<bundles_post_ra>
// kernel: tpu_custom_call.1
= control target key start
LH: loop header
LB: loop body
LE: loop exit
PB: predicated region body
PF: predicated region fallthrough
CT: control target
= control target key end

     0   :  { %s1168_s0 = inlined_call_operand.hbm [shape: f32[4,8,128], index: 0, kind: input, shape index: {}]   ;;  %s1169_s1 = inlined_call_operand.hbm [shape: f32[4,8,128], index: 1, kind: input, shape index: {}]   ;;  %s1170_s2 = inlined_call_operand.hbm [shape: f32[2,8,128], index: 2, kind: input, shape index: {}]   ;;  %s1171_s3 = inlined_call_operand.hbm [shape: f32[2,1,2,8,128], index: 3, kind: output, shape index: {}]  }
   0x1   :  { %1181 = sst [smem:[#allocation17_spill]] %s1168_s0 }
   0x2   :  { %1182 = sst [smem:[#allocation18_spill]] %s1169_s1 }
   0x3   :  { %1183 = sst [smem:[#allocation19_spill]] %s1171_s3 }
   0x4   :  { %8 = vsyncpa [#allocation3], 0 }
   0x5   :  { %10 = vsyncpa [#allocation3 + $0x1], 0 }
   0x6   :  { %11 = vsyncpa [#allocation6], 0 }
   0x7   :  { %13 = vsyncpa [#allocation6 + $0x1], 0 }
   0x8   :  { %14 = vsyncpa [#allocation4], 0 }
   0x9   :  { %16 = vsyncpa [#allocation4 + $0x1], 0  ;;  %s856_s12 = smov 0   ;;  %s858_s13 = smov 0  }
   0xa   :  { %s860_s14 = smov 0   ;;  %s862_s15 = smov 0  }
   0xb   :  { %s864_s16 = smov 0   ;;  %s866_s17 = smov 0  }
   0xc   :  { %s868_s18 = smov 0   ;;  %s870_s19 = smov 0  }
   0xd   :  { %s872_s20 = smov 0   ;;  %s874_s21 = smov 0  }
   0xe   :  { %s876_s22 = smov 0   ;;  %s878_s23 = smov 0  }
   0xf LB: > { %1184 = sst [smem:[#allocation13_spill]] %s820_s21  ;;  %s915_s24 = sadd.s32 4294967295, %s828_s23   ;;  %s828_s23 = sphi %s878_s23, %s22_s23   ;;  %s824_s22 = sphi %s876_s22, %s1217_s22   ;;  %s820_s21 = sphi %s874_s21, %s1216_s21   ;;  %s816_s20 = sphi %s872_s20, %s1226_s20   ;;  %s812_s19 = sphi %s870_s19, %s1225_s19   ;;  %s808_s18 = sphi %s868_s18, %s1224_s18   ;;  %s804_s17 = sphi %s866_s17, %s1223_s17   ;;  %s800_s16 = sphi %s864_s16, %s1222_s16   ;;  %s796_s15 = sphi %s862_s15, %s1221_s15   ;;  %s792_s14 = sphi %s860_s14, %s1220_s14   ;;  %s788_s13 = sphi %s858_s13, %s1219_s13   ;;  %s784_s12 = sphi %s856_s12, %s1218_s12  }
  0x10   : > { %1185 = sst [smem:[#allocation14_spill]] %s824_s22  ;;  %s34_s25 = sadd.s32 1, %s824_s22 }
  0x11   : > { %p36_p0 = scmp.ge.s32.totalorder %s34_s25, 2  ;;  %s1172_s26 = sshll.u32 %s824_s22, 1 }
  0x12   : > { %p53_p1 = scmp.eq.s32.totalorder %s828_s23, 0  ;;  %p1176_p2 = scmp.eq.s32.totalorder %s915_s24, 0 }
  0x13   : > { %s1228_s25 = smov (%p36_p0, %s34_s25), 0  ;;  %s69_s27 = sadd.s32 1, %s1172_s26 }
  0x14   : > { %1186 = sst [smem:[#allocation15_spill]] %s1228_s25  ;;  %s77_s28 = sadd.s32 1, %s804_s17 }
  0x15   : > { %s1173_s29 = sshll.u32 %s1228_s25, 1  ;;  %p84_p3 = scmp.ne.s32.totalorder %s804_s17, %s800_s16 }
  0x16   : > { %s71_s30 = sadd.s32 1, %s1173_s29  ;;  %p90_p4 = scmp.ne.s32.totalorder %s800_s16, %s796_s15 }
  0x17   : > { %s72_s4 = ssub.s32 %s69_s27, %s71_s30  ;;  %p934_p5 = por %p84_p3, %p53_p1 }
  0x18   : > { %p75_p6 = scmp.eq.s32.totalorder %s72_s4, 0  ;;  %p940_p7 = por %p90_p4, %p1176_p2 }
  0x19   : > { %s100_s7 = ssub.s32 %s824_s22, %s1228_s25  ;;  %p1175_p10 = scmp.lt.s32.totalorder %s828_s23, 2 }
  0x1a   : > { %s948_s8 = scalar_select %p75_p6, %s804_s17, %s77_s28  }
  0x1b   : > { %p950_p9 = scmp.eq.s32.totalorder %s100_s7, 0  ;;  %s482_s10 = sshll.u32 %s824_s22, 8 }
  0x1c   : > { %s190_s11 = sand.u32 1, %s828_s23   ;;  %s192_s15 = sand.u32 1, %s804_s17  }
  0x1d   : > { %s466_s27 = sshll.u32 %s192_s15, 3  ;;  %s1190_s1 = sld [smem:[#allocation18_spill]] }
  0x1e   : > { %s194_s3 = scalar_lea.vmem [#allocation5], %s466_s27  ;;  %p967_p11 = pnand %p1175_p10, %p934_p5 }
  0x1f   : > { %s204_s21 = sshll.u32 %s194_s3, 4  ;;  %p471_p12 = scmp.ge.s32.totalorder %s828_s23, 1  ;;  %s205_s21 = int_to_ptr.vmem [resolvable:$true] %s204_s21 }
  0x20   : > { %p228_p13 = scmp.lt.s32.totalorder %s828_s23, 3  ;;  %s973_s7 = scalar_lea.sflag [#allocation6], %s190_s11 }
  0x21   : > { %p609_p0 = pneg %p967_p11  ;;  %s620_s15 = scalar_lea.vmem %s205_s21, 128 }
  0x22   : > { %p621_p3 = scmp.ne.s32.totalorder %s205_s21, %s620_s15 }
  0x23   : > { %s365_s26 = scalar_lea.hbm %s1190_s1, %s482_s10 }
  0x24   : > { %s366_s29 = scalar_lea.hbm %s365_s26, 128  ;;  %p623_p4 = pnand %p621_p3, %p609_p0 }
  0x25   : > { %s830_s26 = smov [#allocation5]  }
  0x26   : > { %p624_p6 = pneg %p623_p4  ;;  %s625_s3 = sshll.u32 %s830_s26, 4  ;;  %s626_s3 = int_to_ptr.vmem [resolvable:$false] %s625_s3 }
  0x27   : > { %s627_s5 = scalar_lea.vmem %s626_s3, 256  ;;  %p628_p5 = scmp.lt.s32.totalorder %s205_s21, %s626_s3 }
  0x28   : > { %p629_p8 = scmp.lt.s32.totalorder %s627_s5, %s620_s15 }
  0x2a   : > { %p630_p10 = por %p629_p8, %p628_p5 }
  0x2c   : > { %p631_p2 = pnand %p630_p10, %p624_p6 }
  0x2e   : > { %634 = shalt.err (!%p631_p2)
}
  0x2f   : > { %499 = dma.hbm_to_vmem [thread:$0]  (!%p967_p11), %s366_s29, 128, %s205_s21, %s973_s7  }
  0x30   : > { %p984_p2 = pnand %p471_p12, %p228_p13  ;;  %s1193_s27 = sshll.u32 %s1228_s25, 1 }
  0x31   : > { %s1194_s30 = sshll.u32 %s824_s22, 1  ;;  %s45_s28 = sadd.s32 1, %s816_s20 }
  0x32   : > { %s40_s4 = ssub.s32 %s1194_s30, %s1193_s27  ;;  %p52_p10 = scmp.ne.s32.totalorder %s816_s20, %s812_s19 }
  0x33   : > { %p43_p8 = scmp.eq.s32.totalorder %s40_s4, 0  ;;  %p58_p0 = scmp.ne.s32.totalorder %s812_s19, %s808_s18 }
  0x34   : > { %p54_p3 = por %p53_p1, %p52_p10  ;;  %p1196_p4 = scmp.eq.s32.totalorder %s915_s24, 0 }
  0x35   : > { %s998_s15 = scalar_select %p43_p8, %s816_s20, %s45_s28  }
  0x36   : > { %p1004_p6 = por %p1196_p4, %p58_p0  ;;  %s170_s29 = sand.u32 1, %s816_s20  }
  0x37   : > { %1195 = sst [smem:[#allocation16_spill]] %s998_s15  ;;  %s463_s27 = sshll.u32 %s170_s29, 3 }
  0x38   : > { %s1198_s0 = sld [smem:[#allocation17_spill]]  ;;  %p1199_p11 = scmp.lt.s32.totalorder %s828_s23, 2 }
  0x39   : > { %s174_s18 = scalar_lea.vmem [#allocation2], %s463_s27  ;;  %s171_s28 = scalar_lea.sflag [#allocation3], %s170_s29 }
  0x3a   : > { %p1016_p12 = pnand %p1199_p11, %p54_p3  ;;  %s183_s4 = sshll.u32 %s174_s18, 4  ;;  %s184_s4 = int_to_ptr.vmem [resolvable:$true] %s183_s4 }
  0x3b   : > { %s649_s1 = scalar_lea.vmem %s184_s4, 128  ;;  %s831_s25 = smov [#allocation2]  }
  0x3c   : > { %p638_p13 = pneg %p1016_p12  ;;  %p650_p5 = scmp.ne.s32.totalorder %s184_s4, %s649_s1 }
  0x3d   : > { %s654_s26 = sshll.u32 %s831_s25, 4  ;;  %s655_s26 = int_to_ptr.vmem [resolvable:$false] %s654_s26 }
  0x3e   : > { %s181_s5 = scalar_lea.hbm %s1198_s0, %s482_s10  ;;  %p652_p8 = pnand %p650_p5, %p638_p13 }
  0x3f   : > { %s656_s10 = scalar_lea.vmem %s655_s26, 256  ;;  %p657_p0 = scmp.lt.s32.totalorder %s184_s4, %s655_s26 }
  0x40   : > { %p653_p10 = pneg %p652_p8  ;;  %p658_p3 = scmp.lt.s32.totalorder %s656_s10, %s649_s1 }
  0x42   : > { %p659_p4 = por %p658_p3, %p657_p0 }
  0x44   : > { %p660_p11 = pnand %p659_p4, %p653_p10 }
  0x46   : > { %663 = shalt.err (!%p660_p11)
}
  0x47   : > { %496 = dma.hbm_to_vmem [thread:$0]  (!%p1016_p12), %s181_s5, 128, %s184_s4, %s171_s28  }
  0x48   : > { %s456_s1 = sadd.s32 4294967294, %s828_s23   ;;  %s105_s25 = sadd.s32 1, %s792_s14 }
  0x49   : > { %p112_p13 = scmp.ne.s32.totalorder %s792_s14, %s788_s13  ;;  %p118_p8 = scmp.ne.s32.totalorder %s788_s13, %s784_s12 }
  0x4a   : > { %s1031_s29 = scalar_select %p950_p9, %s792_s14, %s105_s25  }
  0x4b   : > { %p1035_p5 = por %p112_p13, %p53_p1  ;;  %p144_p10 = scmp.eq.s32.totalorder %s915_s24, 1 }
  0x4c   : > { %p150_p0 = scmp.eq.s32.totalorder %s456_s1, 1  ;;  %p1202_p3 = scmp.eq.s32.totalorder %s915_s24, 0 }
  0x4d   : > { %s213_s5 = sand.u32 1, %s792_s14   ;;  %p1049_p12 = por %p144_p10, %p112_p13 }
  0x4e   : > { %p1044_p4 = por %p118_p8, %p1202_p3  ;;  %p1053_p9 = por %p150_p0, %p118_p8 }
  0x4f   : > { %s1204_s30 = scalar_select %p1049_p12, 1, 0 }
  0x50   : > { %s1203_s27 = scalar_select %p1044_p4, 1, 0 }
  0x51   : > { %s1205_s9 = scalar_select %p1053_p9, 1, 0 }
  0x52   : > { %s469_s18 = sshll.u32 %s213_s5, 3  ;;  %s470_s4 = sshll.u32 %s824_s22, 7 }
  0x53   : > { %s221_s10 = scalar_lea.hbm %s1170_s2, %s470_s4  ;;  %s215_s1 = scalar_lea.vmem [#allocation7], %s469_s18 }
  0x54   : > { %s223_s25 = sshll.u32 %s215_s1, 4  ;;  %p1206_p1 = scmp.lt.s32.totalorder %s828_s23, 2  ;;  %s224_s25 = int_to_ptr.vmem [resolvable:$true] %s223_s25 }
  0x55   : > { %s677_s15 = scalar_lea.vmem %s224_s25, 128  ;;  %s832_s5 = smov [#allocation7]  }
  0x56   : > { %p1065_p11 = pnand %p1206_p1, %p1035_p5  ;;  %p678_p8 = scmp.ne.s32.totalorder %s224_s25, %s677_s15 }
  0x57   : > { %s682_s22 = sshll.u32 %s832_s5, 4  ;;  %s683_s22 = int_to_ptr.vmem [resolvable:$false] %s682_s22 }
  0x58   : > { %p666_p13 = pneg %p1065_p11  ;;  %s684_s4 = scalar_lea.vmem %s683_s22, 256 }
  0x59   : > { %p685_p3 = scmp.lt.s32.totalorder %s224_s25, %s683_s22  ;;  %p686_p9 = scmp.lt.s32.totalorder %s684_s4, %s677_s15 }
  0x5a   : > { %p680_p10 = pnand %p678_p8, %p666_p13 }
  0x5b   : > { %p687_p12 = por %p686_p9, %p685_p3 }
  0x5c   : > { %p681_p0 = pneg %p680_p10 }
  0x5e   : > { %p688_p4 = pnand %p687_p12, %p681_p0 }
  0x60   : > { %691 = shalt.err (!%p688_p4)
}
  0x61   : > { %502 = dma.hbm_to_vmem [thread:$0]  (!%p1065_p11), %s221_s10, 128, %s224_s25, %s973_s7  }
  0x62   : > { %232 = sbr.rel (%p984_p2) target bundleno = 140 (0x8c), region = 32  ;;  %s234_s3 = sand.u32 (!%p984_p2), 1, %s812_s19  }
  0x63   : > { %s472_s18 = sshll.u32 (!%p984_p2), %s234_s3, 3  ;;  %s235_s28 = scalar_lea.sflag (!%p984_p2), [#allocation3], %s234_s3 }
  0x64   : > { %s238_s26 = scalar_lea.vmem (!%p984_p2), [#allocation2], %s472_s18 }
  0x67   : > { %767 = dma.done.wait (%p1004_p6), %s235_s28, 128  }
  0x68   : > { %769 = vsyncadd (%p1004_p6), %s235_s28, 4294967168  ;;  %s243_s0 = sand.u32 1, %s915_s24   ;;  %s245_s22 = sand.u32 1, %s800_s16  }
  0x69   : > { %s473_s7 = sshll.u32 %s245_s22, 3  ;;  %s244_s15 = scalar_lea.sflag [#allocation6], %s243_s0 }
  0x6a   : > { %s247_s11 = scalar_lea.vmem [#allocation5], %s473_s7 }
  0x6b   : > { %771 = dma.done.wait (%p940_p7), %s244_s15, 128  }
  0x6c   : > { %773 = vsyncadd (%p940_p7), %s244_s15, 4294967168  ;;  %s1088_s10 = sand.u32 1, %s788_s13   ;;  %p1208_p2 = scmp.ne.s32.totalorder %s1203_s27, 0 }
  0x6d   : > { %s474_s21 = sshll.u32 %s1088_s10, 3 }
  0x6e   : > { %s256_s1 = scalar_lea.vmem [#allocation7], %s474_s21 }
  0x6f   : > { %775 = dma.done.wait (%p1208_p2), %s244_s15, 128  }
  0x70   : > { %777 = vsyncadd (%p1208_p2), %s244_s15, 4294967168  ;;  %s1209_s24 = sld [smem:[#allocation13_spill]]  ;;  %s475_s25 = sshll.u32 %s1088_s10, 4  ;;  %v292_v0 = vld [vmem:[%s238_s26] sm:$0xff]  ;;  %v293_v1 = vld [vmem:[%s247_s11] sm:$0xff] }
  0x71   : > { %v294_v2 = vld [vmem:[%s256_s1] sm:$0xff]  ;;  %v295_v3 = vsub.f32 %v292_v0, %v293_v1  ;;  %s288_s6 = scalar_lea.vmem [#allocation8], %s475_s25  ;;  %s1210_s18 = sld [smem:[#allocation19_spill]] }
  0x72   : > { %v296_v4 = vsub.f32 1.0, %v294_v2  ;;  %s322_s5 = sshll.u32 %s288_s6, 4  ;;  %s307_s0 = scalar_lea.sflag [#allocation4], %s1088_s10  ;;  %s1097_s5 = int_to_ptr.vmem [resolvable:$true] %s322_s5 }
  0x73   : > { %v298_v6 = vmul.f32 %v295_v3, %v294_v2  ;;  %s692_s22 = scalar_lea.vmem %s1097_s5, 256  ;;  %p1212_p6 = scmp.ne.s32.totalorder %s1204_s30, 0 }
  0x74   : > { %v297_v5 = vmul.f32 %v296_v4, %v295_v3  ;;  %p693_p7 = scmp.ne.s32.totalorder %s1097_s5, %s692_s22  ;;  %s833_s7 = smov [#allocation8]  }
  0x75   : > { %v300_v8 = vmul.f32 %v298_v6, %v298_v6  ;;  %s696_s15 = sshll.u32 %s833_s7, 4  ;;  %s697_s15 = int_to_ptr.vmem [resolvable:$false] %s696_s15 }
  0x76   : > { %s484_s4 = sshll.u32 %s1209_s24, 8  ;;  %v299_v7 = vmul.f32 %v297_v5, %v297_v5  ;;  %p694_p5 = pnand %p693_p7, %p1212_p6 }
  0x77   : > { %s1211_s28 = smov %s1210_s18  ;;  %s1102_s26 = scalar_lea.hbm %s1210_s18, %s484_s4  ;;  %476 = vst [vmem:[%s288_s6 + $0x8] sm:$0xff] %v300_v8 }
  0x78   : > { %303 = vst [vmem:[%s288_s6] sm:$0xff] %v299_v7  ;;  %p695_p4 = pneg %p694_p5  ;;  %s698_s11 = scalar_lea.vmem %s697_s15, 512 }
  0x79   : > { %p699_p12 = scmp.lt.s32.totalorder %s1097_s5, %s697_s15  ;;  %p700_p9 = scmp.lt.s32.totalorder %s698_s11, %s692_s22 }
  0x7b   : > { %p701_p1 = por %p700_p9, %p699_p12 }
  0x7d   : > { %p702_p11 = pnand %p701_p1, %p695_p4 }
  0x7f   : > { %705 = shalt.err (!%p702_p11)
}
  0x80   : > { %s706_s21 = scalar_lea.hbm %s1102_s26, 256  ;;  %s710_s25 = scalar_lea.hbm %s1211_s28, 512 }
  0x81   : > { %p707_p13 = scmp.ne.s32.totalorder %s1102_s26, %s706_s21  ;;  %p711_p0 = scmp.lt.s32.totalorder %s1102_s26, %s1211_s28 }
  0x82   : > { %p712_p3 = scmp.lt.s32.totalorder %s710_s25, %s706_s21 }
  0x83   : > { %p708_p8 = pnand %p707_p13, %p1212_p6 }
  0x84   : > { %p713_p2 = por %p712_p3, %p711_p0 }
  0x85   : > { %p709_p10 = pneg %p708_p8 }
  0x87   : > { %p714_p7 = pnand %p713_p2, %p709_p10 }
  0x89   : > { %717 = shalt.err (!%p714_p7)
}
  0x8a   : > { %s834_s3 = smov 128   ;;  %s835_s27 = smov 8  }
  0x8b   : > { %491 = dma.vmem_to_hbm [thread:$0]  (%p1212_p6), %s1097_s5, 256, %s1102_s26, %s307_s0, %s834_s3, %s834_s3, %s835_s27  }
  0x8c PF: > { %s337_s18 = sand.u32 1, %s784_s12   ;;  %p1213_p5 = scmp.ne.s32.totalorder %s1205_s9, 0 }
  0x8d   : > { %p1214_p4 = scmp.ge.s32.totalorder %s828_s23, 2  ;;  %s338_s22 = scalar_lea.sflag [#allocation4], %s337_s18 }
  0x8f   : > { %p504_p12 = pnand %p1214_p4, %p1213_p5 }
  0x91   : > { %p505_p9 = pneg %p504_p12 }
  0x93   : > { %779 = dma.done.wait (%p505_p9), %s338_s22, 256  }
  0x94   : > { %781 = vsyncadd (%p505_p9), %s338_s22, 4294967040  ;;  %s22_s23 = sadd.s32 1, %s828_s23   ;;  %s1215_s30 = sld [smem:[#allocation16_spill]] }
  0x95   : > { %p19_p1 = scmp.ge.s32.totalorder %s22_s23, 4   ;;  %s1216_s21 = sld [smem:[#allocation14_spill]] }
  0x96   : > { %s1217_s22 = sld [smem:[#allocation15_spill]]  ;;  %s1218_s12 = smov %s788_s13 }
  0x97   : > { %s1219_s13 = smov %s792_s14  ;;  %s1220_s14 = smov %s1031_s29 }
  0x98   : > { %s1221_s15 = smov %s800_s16  ;;  %s1222_s16 = smov %s804_s17 }
  0x99   : > { %s1223_s17 = smov %s948_s8  ;;  %s1224_s18 = smov %s812_s19 }
  0x9a   : > { %s1225_s19 = smov %s816_s20  ;;  %s1226_s20 = smov %s1215_s30 }
  0x9b   :  { %21 = sbr.rel (!%p19_p1) target bundleno = 15 (0xf), region = 102 }
  0xa0   :  { %343 = vsyncpa [#allocation3], 1 }
  0xa1   :  { %345 = vsyncpa [#allocation3 + $0x1], 1 }
  0xa2   :  { %346 = vsyncpa [#allocation6], 1 }
  0xa3   :  { %348 = vsyncpa [#allocation6 + $0x1], 1 }
  0xa4   :  { %349 = vsyncpa [#allocation4], 1 }
  0xa5   :  { %351 = vsyncpa [#allocation4 + $0x1], 1 }

</bundles_post_ra>
